<compile_context>
chip_gen: v5e
topology: v5e:2x2
jax: 0.10.0
libtpu: 0.0.40
codegen_flags: <defaults>
</compile_context>

<pallas_src>
import jax
import jax.numpy as jnp
from jax.experimental import pallas as pl
from jax.experimental.pallas import tpu as pltpu


# ----------------------------- Pallas kernel ------------------------------ #

def _affine_kernel(x_ref, params_ref, o_ref):
    # x_ref:      (tile_nc, tile_hw) VMEM tile of the flattened input
    # params_ref: (tile_nc, 2) f32; lane 0 = per-row scale, lane 1 = per-row shift
    x = x_ref[...].astype(jnp.float32)
    params = params_ref[...]
    scale = params[:, 0:1]           # (tile_nc, 1), broadcast across lanes
    shift = params[:, 1:2]           # (tile_nc, 1)
    o_ref[...] = (x * scale + shift).astype(o_ref.dtype)


# --------------------------- per-chip configuration ------------------------ #

_LANE_TARGET = 2048                  # lane-tile cap (multiple of 128) when HW is huge

# generation -> (block_bytes, vmem_limit_bytes or None, force >=2 grid steps)
_GEN_CONFIG = {
    "v7x":     (8 << 20, 48 << 20, True),    # 2 TCs, 64 MiB VMEM/TC, ~3.2 TB/s
    "v6e":     (8 << 20, 64 << 20, False),   # 128 MiB VMEM, ~1.4 TB/s
    "v5e":     (3 << 20, None,     False),   # 16 MiB default scoped VMEM
    "unknown": (3 << 20, None,     False),   # conservative default
}


def _tpu_generation():
    try:
        kind = jax.devices()[0].device_kind.lower()
    except Exception:
        return "unknown"
    if "v7" in kind:
        return "v7x"
    if "v6" in kind:
        return "v6e"
    if "v5e" in kind or "v5 lite" in kind or "v5lite" in kind:
        return "v5e"
    return "unknown"


# --------------------------- tile-size selection --------------------------- #

def _choose_tiles(nc, hw, itemsize, block_bytes, want_two_blocks):
    # Lane (fast) axis: use the full row whenever it fits the cap -> lane-dense
    # unmasked stores and a single contiguous DMA per block, no ragged column.
    if hw <= _LANE_TARGET:
        tile_hw = hw
    else:
        tile_hw = _LANE_TARGET                       # multiple of 128

    # Sublane packing: 8 rows for 32-bit, 16 for bf16, 32 for int8/fp8.
    row_align = 8 * max(1, 4 // max(1, itemsize))

    rows_budget = max(1, block_bytes // max(1, tile_hw * itemsize))
    if nc <= row_align:
        tile_nc = nc                                 # full (narrow) dim is legal
    else:
        tile_nc = min(nc, rows_budget)
        tile_nc = max(row_align, (tile_nc // row_align) * row_align)

    # v7x: make sure both TensorCores get at least one grid step each.
    if want_two_blocks and pl.cdiv(nc, tile_nc) * pl.cdiv(hw, tile_hw) < 2:
        if nc >= 2 * row_align:
            half = pl.cdiv(nc, 2)
            tile_nc = max(row_align, pl.cdiv(half, row_align) * row_align)
        elif hw >= 256:
            half = pl.cdiv(hw, 2)
            tile_hw = max(128, pl.cdiv(half, 128) * 128)

    return tile_nc, tile_hw


# ------------------------------ host wrapper ------------------------------- #

def pallas_channel_affine(x_nchw, scale_c, shift_c):
    """y = x * scale[None,:,None,None] + shift[None,:,None,None] (NCHW)."""
    N, C, H, W = x_nchw.shape
    HW = H * W
    NC = N * C

    # Match PyTorch/NumPy type-promotion semantics for the output dtype.
    out_dtype = jnp.result_type(x_nchw.dtype, scale_c.dtype, shift_c.dtype)

    # Flatten to a lane-dense 2-D slab; pack per-row scale/shift into one
    # (NC, 2) f32 array (one param DMA per row-tile, half the padded VMEM).
    x2d = x_nchw.reshape(NC, HW)
    scale_rows = jnp.broadcast_to(
        scale_c.astype(jnp.float32)[None, :], (N, C)).reshape(NC)
    shift_rows = jnp.broadcast_to(
        shift_c.astype(jnp.float32)[None, :], (N, C)).reshape(NC)
    params = jnp.stack([scale_rows, shift_rows], axis=-1)      # (NC, 2) f32

    gen = _tpu_generation()
    block_bytes, vmem_limit, two_cores = _GEN_CONFIG[gen]
    itemsize = max(x2d.dtype.itemsize, jnp.dtype(out_dtype).itemsize)
    tile_nc, tile_hw = _choose_tiles(NC, HW, itemsize, block_bytes, two_cores)
    grid = (pl.cdiv(NC, tile_nc), pl.cdiv(HW, tile_hw))

    compiler_kwargs = dict(dimension_semantics=("parallel", "parallel"))
    if vmem_limit is not None:
        compiler_kwargs["vmem_limit_bytes"] = vmem_limit

    cost = pl.CostEstimate(
        flops=2 * NC * HW,
        bytes_accessed=NC * HW * (x2d.dtype.itemsize
                                  + jnp.dtype(out_dtype).itemsize)
                       + params.size * 4,
        transcendentals=0,
    )

    y2d = pl.pallas_call(
        _affine_kernel,
        out_shape=jax.ShapeDtypeStruct((NC, HW), out_dtype),
        grid_spec=pl.GridSpec(
            grid=grid,
            in_specs=[
                pl.BlockSpec((tile_nc, tile_hw), lambda i, j: (i, j)),
                pl.BlockSpec((tile_nc, 2), lambda i, j: (i, 0)),
            ],
            out_specs=pl.BlockSpec((tile_nc, tile_hw), lambda i, j: (i, j)),
        ),
        compiler_params=pltpu.CompilerParams(**compiler_kwargs),
        cost_estimate=cost,
    )(x2d, params)

    return y2d.reshape(N, C, H, W)


# --------------------------- LambdaModule (JAX) ---------------------------- #

class LambdaModule:
    """JAX equivalent of volt.util.LambdaModule: stores a lambda + kwargs."""

    def __init__(self, lambd, **kwargs):
        assert callable(lambd)
        self.lambd = lambd
        self.pars = list(kwargs.keys())
        for k, v in kwargs.items():
            setattr(self, k, v)

    def __call__(self, x):
        kwargs = {k: getattr(self, k) for k in self.pars}
        return self.lambd(x, **kwargs)


# ----------------------------------- demo ---------------------------------- #

if __name__ == "__main__":
    key = jax.random.PRNGKey(0)
    N, C, H, W = 2, 4, 16, 16

    kx, ks, kb = jax.random.split(key, 3)
    x = jax.random.normal(kx, (N, C, H, W), dtype=jnp.float32)
    # Deterministic per-channel parameters (shapes implied by the chosen lambda).
    scale = jax.random.normal(ks, (C,), dtype=jnp.float32) * 0.1 + 1.0
    shift = jax.random.normal(kb, (C,), dtype=jnp.float32) * 0.1

    module = LambdaModule(
        lambda x, scale, shift: pallas_channel_affine(x, scale, shift),
        scale=scale,
        shift=shift,
    )

    y = module(x)
    y = jax.block_until_ready(y)

    # Correctness check vs. plain-JAX reference of the same lambda semantics.
    y_ref = x * scale[None, :, None, None] + shift[None, :, None, None]
    assert y.shape == (N, C, H, W)
    assert y.dtype == y_ref.dtype
    assert jnp.allclose(y, y_ref, atol=1e-6, rtol=1e-6)

    print("KERNEL_OK")
</pallas_src>

<mosaic_0001>
module attributes {stable_mosaic.version = 11 : i64} {
  func.func @_affine_kernel(%arg0: i32, %arg1: i32, %arg2: memref<8x256xf32, #tpu.memory_space<vmem>>, %arg3: memref<8x2xf32, #tpu.memory_space<vmem>>, %arg4: memref<8x256xf32, #tpu.memory_space<vmem>>) attributes {dimension_semantics = [#tpu.dimension_semantics<parallel>, #tpu.dimension_semantics<parallel>], iteration_bounds = array<i64: 1, 1>, scalar_prefetch = 0 : i64, scratch_operands = 0 : i64, tpu.core_type = #tpu.core_type<tc>, window_params = [{transform_indices = @transform_0, window_bounds = array<i64: 8, 256>}, {transform_indices = @transform_1, window_bounds = array<i64: 8, 2>}, {transform_indices = @transform_2, window_bounds = array<i64: 8, 256>}]} {
    %c0 = arith.constant 0 : index
    %c0_0 = arith.constant 0 : index
    %0 = vector.load %arg2[%c0, %c0_0] : memref<8x256xf32, #tpu.memory_space<vmem>>, vector<8x256xf32>
    %c0_1 = arith.constant 0 : index
    %c0_2 = arith.constant 0 : index
    %1 = vector.load %arg3[%c0_1, %c0_2] : memref<8x2xf32, #tpu.memory_space<vmem>>, vector<8x2xf32>
    %2 = vector.extract_strided_slice %1 {offsets = [0, 0], sizes = [8, 1], strides = [1, 1]} : vector<8x2xf32> to vector<8x1xf32>
    %3 = vector.extract_strided_slice %1 {offsets = [0, 1], sizes = [8, 1], strides = [1, 1]} : vector<8x2xf32> to vector<8x1xf32>
    %4 = vector.broadcast %2 : vector<8x1xf32> to vector<8x256xf32>
    %5 = arith.mulf %0, %4 : vector<8x256xf32>
    %6 = vector.broadcast %3 : vector<8x1xf32> to vector<8x256xf32>
    %7 = arith.addf %5, %6 : vector<8x256xf32>
    %c0_3 = arith.constant 0 : index
    %c0_4 = arith.constant 0 : index
    %8 = vector.load %arg4[%c0_3, %c0_4] : memref<8x256xf32, #tpu.memory_space<vmem>>, vector<8x256xf32>
    tpu.vector_store %arg4[%c0_3, %c0_4], %7 {strides = array<i32>} : memref<8x256xf32, #tpu.memory_space<vmem>>, vector<8x256xf32>,
    return
  }
  func.func @transform_0(%arg0: i32, %arg1: i32) -> (i32, i32) {
    %c0_i32 = arith.constant 0 : i32
    return %arg0, %arg1 : i32, i32
  }
  func.func @transform_1(%arg0: i32, %arg1: i32) -> (i32, i32) {
    %c0_i32 = arith.constant 0 : i32
    %c0_i32_0 = arith.constant 0 : i32
    return %arg0, %c0_i32 : i32, i32
  }
  func.func @transform_2(%arg0: i32, %arg1: i32) -> (i32, i32) {
    %c0_i32 = arith.constant 0 : i32
    return %arg0, %arg1 : i32, i32
  }
}

</mosaic_0001>

<bundles_post_ra>
// kernel: tpu_custom_call.1
= control target key start
LH: loop header
LB: loop body
LE: loop exit
PB: predicated region body
PF: predicated region fallthrough
CT: control target
= control target key end

     0   :  { %7 = vsyncpa [#allocation3], 0  ;;  %s147_s0 = inlined_call_operand.hbm [shape: f32[8,256], index: 0, kind: input, shape index: {}]   ;;  %s148_s1 = inlined_call_operand.vmem [shape: f32[8,2], index: 1, kind: input, shape index: {}]   ;;  %s149_s2 = inlined_call_operand.hbm [shape: f32[8,256], index: 2, kind: output, shape index: {}]  }
   0x1   :  { %8 = vsyncpa [#allocation4], 0  ;;  %s14_s11 = sshll.u32 %s147_s0, 4  ;;  %s119_s12 = smov [#allocation2]   ;;  %s15_s11 = int_to_ptr.hbm [resolvable:$true] %s14_s11 }
   0x2   :  { %s16_s13 = sshll.u32 %s119_s12, 4  ;;  %s17_s13 = int_to_ptr.vmem [resolvable:$true] %s16_s13 }
   0x3   :  { %19 = dma.hbm_to_vmem [thread:$0]  %s15_s11, 256, %s17_s13, [#allocation3]  }
   0x4   :  { %115 = dma.done.wait [#allocation3], 256  }
   0x5   :  { %116 = vsyncadd [#allocation3], 4294967040  ;;  %v120_v0 = vmov 0   ;;  %v28_v1 = vld [vmem:[%s148_s1] sm:$0xff]  ;;  %v121_v2 = vmov 1   ;;  %v27_v5 = vld [vmem:[#allocation2 + $0x8] sm:$0xff] }
   0x6   :  { %65 = vset.pattern.permute.xlu0 %v120_v0  ;;  %v26_v4 = vld [vmem:[#allocation2] sm:$0xff]  ;;  %s122_s0 = smov [#allocation5]   ;;  %s51_s19 = sshll.u32 %s149_s2, 4  ;;  %s52_s19 = int_to_ptr.hbm [resolvable:$true] %s51_s19 }
   0x7   :  { %31 = vperm.xlu0 %65, %v28_v1   ;;  %s49_s16 = sshll.u32 %s122_s0, 4  ;;  %s50_s16 = int_to_ptr.vmem [resolvable:$true] %s49_s16 }
   0xf   :  { %66 = vset.pattern.permute.xlu0 %v121_v2 }
  0x10   :  { %37 = vperm.xlu0 %66, %v28_v1  }
  0x79   :  { %v32_v3 = vpop.permute.xlu0 %31 }
  0x7a   :  { %v34_v6 = vmul.f32 %v32_v3, %v26_v4  ;;  %v35_v7 = vmul.f32 %v32_v3, %v27_v5 }
  0x82   :  { %v38_v8 = vpop.permute.xlu0 %37 }
  0x83   :  { %v40_v9 = vadd.f32 %v38_v8, %v34_v6  ;;  %v41_v10 = vadd.f32 %v38_v8, %v35_v7 }
  0x85   :  { %42 = vst [vmem:[#allocation5] sm:$0xff] %v40_v9 }
  0x86   :  { %43 = vst [vmem:[#allocation5 + $0x8] sm:$0xff] %v41_v10 }
  0x87   :  { %54 = dma.vmem_to_hbm [thread:$0]  %s50_s16, 256, %s52_s19, [#allocation4]  }
  0x88   :  { %117 = dma.done.wait [#allocation4], 256  }
  0x89   :  { %118 = vsyncadd [#allocation4], 4294967040 }
  0x8a   :  { %59 = vsyncpa [#allocation3], 1 }
  0x8b   :  { %60 = vsyncpa [#allocation4], 1 }

</bundles_post_ra>
